<compile_context>
chip_gen: v5e
topology: v5e:2x2
jax: 0.10.0
libtpu: 0.0.40
codegen_flags: <defaults>
</compile_context>

<pallas_src>
import functools

import jax
import jax.numpy as jnp
from jax.experimental import pallas as pl
from jax.experimental.pallas import tpu as pltpu


def _round_up(x: int, m: int) -> int:
    return (x + m - 1) // m * m


# Conservative per-step working-set budget so tiles fit v7x (64 MiB physical,
# 32 MiB default scoped limit) as well as v5e/v6e.
_VMEM_WORK_BUDGET = 40 * 1024 * 1024
_VMEM_LIMIT_CAP = 56 * 1024 * 1024


# ----------------------------- kernels --------------------------------------

def _mlp_fused_kernel(x_ref, w_in_ref, b_in_ref, w_out_ref, b_out_ref, buf_ref,
                      o_ref):
    """Single pass: both weight matrices VMEM-resident, no accumulator."""
    x = x_ref[...]
    z = jnp.dot(x, w_in_ref[...], preferred_element_type=jnp.float32)
    z = jnp.maximum(z + b_in_ref[...], 0.0)
    y = jnp.dot(z.astype(w_out_ref.dtype), w_out_ref[...],
                preferred_element_type=jnp.float32)
    y = jnp.maximum(y + b_out_ref[...], 0.0) + buf_ref[...]
    o_ref[...] = y.astype(o_ref.dtype)


def _mlp_streamed_kernel(x_ref, w_in_ref, b_in_ref, w_out_ref, b_out_ref,
                         buf_ref, o_ref, acc_ref):
    """H-sliced weights; partial second GEMM accumulated in f32 VMEM scratch."""
    h = pl.program_id(1)

    @pl.when(h == 0)
    def _():
        # Fold b_out into the accumulator init (saves a VPU add at finalize).
        acc_ref[...] = jnp.broadcast_to(
            b_out_ref[...].astype(jnp.float32), acc_ref.shape)

    x = x_ref[...]
    z = jnp.dot(x, w_in_ref[...], preferred_element_type=jnp.float32)
    z = jnp.maximum(z + b_in_ref[...], 0.0)
    acc_ref[...] += jnp.dot(z.astype(w_out_ref.dtype), w_out_ref[...],
                            preferred_element_type=jnp.float32)

    @pl.when(h == pl.num_programs(1) - 1)
    def _():
        o_ref[...] = (jnp.maximum(acc_ref[...], 0.0)
                      + buf_ref[...]).astype(o_ref.dtype)


# ----------------------------- wrapper ---------------------------------------

def prepare_mlp_params(w_in, b_in, w_out, b_out, buffer, *,
                       compute_dtype=jnp.bfloat16):
    """Pad weights to (8,128)-aligned geometry and cast GEMM operands to the
    MXU-native dtype ONCE (do not pay this per forward call)."""
    D, H = w_in.shape
    Dp = _round_up(D, 128)
    Hp = _round_up(H, 128)
    w_in_p = jnp.pad(w_in, ((0, Dp - D), (0, Hp - H))).astype(compute_dtype)
    w_out_p = jnp.pad(w_out, ((0, Hp - H), (0, Dp - D))).astype(compute_dtype)
    b_in_p = jnp.pad(b_in, (0, Hp - H)).reshape(1, Hp).astype(jnp.float32)
    b_out_p = jnp.pad(b_out, (0, Dp - D)).reshape(1, Dp).astype(jnp.float32)
    buf_p = jnp.pad(buffer, (0, Dp - D)).reshape(1, Dp).astype(jnp.float32)
    return w_in_p, b_in_p, w_out_p, b_out_p, buf_p


@functools.partial(jax.jit,
                   static_argnames=("block_b", "block_h", "force_streamed"))
def mlp_forward(x, w_in, b_in, w_out, b_out, buffer, *,
                block_b=1024, block_h=512, force_streamed=False):
    """x: (B, D) unpadded. Weights/biases are the pre-padded/cast outputs of
    prepare_mlp_params: w_in (Dp, Hp), w_out (Hp, Dp), biases/buffer (1, *)."""
    B, D = x.shape
    Dp, Hp = w_in.shape
    cdt = w_in.dtype
    in_bytes = jnp.dtype(cdt).itemsize
    out_dtype = x.dtype
    out_bytes = jnp.dtype(out_dtype).itemsize

    # Minimum batch tile: 16 rows for sub-32-bit packing, 8 otherwise.
    min_tb = 16 if in_bytes < 4 else 8

    # Fused (weights fully resident) vs streamed (H-sliced + f32 acc).
    w_resident = 2 * 2 * Dp * Hp * in_bytes          # dbl-buffered w_in + w_out
    bias_bytes = 2 * 8 * (Hp + 2 * Dp) * 4           # padded-sublane biases/buffer
    fused = (not force_streamed) and (
        w_resident + bias_bytes
        + 2 * min_tb * Dp * (in_bytes + out_bytes) < _VMEM_WORK_BUDGET)

    if fused:
        tH = Hp
        per_row = 2 * Dp * (in_bytes + out_bytes)    # x + out, dbl-buffered
        tb_cap = (_VMEM_WORK_BUDGET - w_resident - bias_bytes) // per_row
    else:
        # Largest tH (multiple of 128, preferring 256/512 multiples) that
        # divides Hp and is <= block_h.
        tH = min(block_h, Hp)
        tH = max(128, (tH // 128) * 128)
        while tH > 128 and Hp % tH != 0:
            tH -= 128
        w_slice = 2 * 2 * Dp * tH * in_bytes
        per_row = 2 * Dp * (in_bytes + out_bytes) + 4 * Dp   # + f32 acc
        tb_cap = (_VMEM_WORK_BUDGET - w_slice - bias_bytes) // per_row

    tb_cap = max(min_tb, (tb_cap // min_tb) * min_tb)
    tB = min(block_b, _round_up(B, min_tb), tb_cap)
    tB = max(min_tb, (tB // min_tb) * min_tb)
    # v7x megacore: give the "parallel" batch axis >= 2 blocks when B allows.
    if (_round_up(B, tB) // tB) < 2 and B > min_tb:
        tB = max(min_tb, _round_up(_round_up(B, 2) // 2, min_tb))
    Bp = _round_up(B, tB)
    n_batch_blocks = Bp // tB

    # Pad + cast only the activations per call (weights already prepared).
    xp = jnp.pad(x, ((0, Bp - B), (0, Dp - D))).astype(cdt)

    # Cost estimate: weights are re-streamed once per batch block when H is
    # sliced; fetched exactly once when fully resident.
    w_reads = 1 if fused else n_batch_blocks
    flops = 4 * Bp * Dp * Hp
    bytes_accessed = int(Bp * Dp * (in_bytes + out_bytes)
                         + w_reads * 2 * Dp * Hp * in_bytes
                         + (Hp + 2 * Dp) * 4)

    if fused:
        need = (2 * tB * Dp * (in_bytes + out_bytes)
                + w_resident + bias_bytes)
    else:
        need = (2 * tB * Dp * (in_bytes + out_bytes) + tB * Dp * 4
                + 2 * 2 * Dp * tH * in_bytes + bias_bytes)
    vmem_limit = int(min(max(need * 1.25 + (1 << 20), 32 << 20),
                         _VMEM_LIMIT_CAP))

    if fused:
        out_p = pl.pallas_call(
            _mlp_fused_kernel,
            out_shape=jax.ShapeDtypeStruct((Bp, Dp), out_dtype),
            grid_spec=pltpu.PrefetchScalarGridSpec(
                num_scalar_prefetch=0,
                grid=(n_batch_blocks,),
                in_specs=[
                    pl.BlockSpec((tB, Dp), lambda i: (i, 0)),   # x batch tile
                    pl.BlockSpec((Dp, Hp), lambda i: (0, 0)),   # w_in (resident)
                    pl.BlockSpec((1, Hp), lambda i: (0, 0)),    # b_in
                    pl.BlockSpec((Hp, Dp), lambda i: (0, 0)),   # w_out (resident)
                    pl.BlockSpec((1, Dp), lambda i: (0, 0)),    # b_out
                    pl.BlockSpec((1, Dp), lambda i: (0, 0)),    # buffer
                ],
                out_specs=pl.BlockSpec((tB, Dp), lambda i: (i, 0)),
            ),
            compiler_params=pltpu.CompilerParams(
                dimension_semantics=("parallel",),
                vmem_limit_bytes=vmem_limit,
            ),
            cost_estimate=pl.CostEstimate(
                flops=flops, transcendentals=0, bytes_accessed=bytes_accessed),
        )(xp, w_in, b_in, w_out, b_out, buffer)
    else:
        out_p = pl.pallas_call(
            _mlp_streamed_kernel,
            out_shape=jax.ShapeDtypeStruct((Bp, Dp), out_dtype),
            grid_spec=pltpu.PrefetchScalarGridSpec(
                num_scalar_prefetch=0,
                grid=(n_batch_blocks, Hp // tH),
                in_specs=[
                    pl.BlockSpec((tB, Dp), lambda i, h: (i, 0)),  # x batch tile
                    pl.BlockSpec((Dp, tH), lambda i, h: (0, h)),  # w_in H-slice
                    pl.BlockSpec((1, tH), lambda i, h: (0, h)),   # b_in H-slice
                    pl.BlockSpec((tH, Dp), lambda i, h: (h, 0)),  # w_out H-slice
                    pl.BlockSpec((1, Dp), lambda i, h: (0, 0)),   # b_out
                    pl.BlockSpec((1, Dp), lambda i, h: (0, 0)),   # buffer
                ],
                out_specs=pl.BlockSpec((tB, Dp), lambda i, h: (i, 0)),
                scratch_shapes=[pltpu.VMEM((tB, Dp), jnp.float32)],
            ),
            compiler_params=pltpu.CompilerParams(
                dimension_semantics=("parallel", "arbitrary"),
                vmem_limit_bytes=vmem_limit,
            ),
            cost_estimate=pl.CostEstimate(
                flops=flops, transcendentals=0, bytes_accessed=bytes_accessed),
        )(xp, w_in, b_in, w_out, b_out, buffer)

    return out_p[:B, :D]


# ----------------------------- test helpers ----------------------------------

def init_mlp_params(key, dim, dim_multiplier=4, with_buffer=True,
                    dtype=jnp.float32):
    """nn.Linear-like init; weights pre-transposed to (in, out) for row-major GEMMs."""
    hidden = dim_multiplier * dim
    k1, k2, k3, k4, k5 = jax.random.split(key, 5)
    bound_in = 1.0 / jnp.sqrt(dim)
    bound_out = 1.0 / jnp.sqrt(hidden)
    w_in = jax.random.uniform(k1, (dim, hidden), dtype, -bound_in, bound_in)
    b_in = jax.random.uniform(k2, (hidden,), dtype, -bound_in, bound_in)
    w_out = jax.random.uniform(k3, (hidden, dim), dtype, -bound_out, bound_out)
    b_out = jax.random.uniform(k4, (dim,), dtype, -bound_out, bound_out)
    if with_buffer:
        buffer = jax.random.normal(k5, (dim,), dtype)
    else:
        buffer = jnp.zeros((dim,), dtype)  # adding zeros == no buffer
    return w_in, b_in, w_out, b_out, buffer


def mlp_reference(x, w_in, b_in, w_out, b_out, buffer):
    z = jnp.maximum(x @ w_in + b_in, 0.0)
    z = jnp.maximum(z @ w_out + b_out, 0.0)
    return z + buffer


def _run_case(key, batch, dim, dim_multiplier, *, compute_dtype=jnp.bfloat16,
              block_b=1024, block_h=512, force_streamed=False, tol=5e-2,
              with_buffer=True):
    kx, kp = jax.random.split(key)
    x = jax.random.normal(kx, (batch, dim), jnp.float32)
    w_in, b_in, w_out, b_out, buffer = init_mlp_params(
        kp, dim, dim_multiplier=dim_multiplier, with_buffer=with_buffer)
    params = prepare_mlp_params(w_in, b_in, w_out, b_out, buffer,
                                compute_dtype=compute_dtype)
    out = mlp_forward(x, *params, block_b=block_b, block_h=block_h,
                      force_streamed=force_streamed)
    out = jax.block_until_ready(out)
    ref = mlp_reference(x, w_in, b_in, w_out, b_out, buffer)
    assert out.shape == (batch, dim)
    max_err = float(jnp.max(jnp.abs(out - ref)))
    assert jnp.allclose(out, ref, atol=tol, rtol=tol), (
        f"mismatch vs reference (batch={batch}, dim={dim}, "
        f"dtype={compute_dtype}, max_err={max_err})")


if __name__ == "__main__":
    key = jax.random.PRNGKey(0)
    k1, k2, k3, k4 = jax.random.split(key, 4)

    # Small module-demo shape (dim=32 pads to 128 lanes; single fused step).
    _run_case(k1, batch=8, dim=32, dim_multiplier=4)

    # Larger fused case: >=2 batch blocks on the 'parallel' axis (megacore).
    _run_case(k2, batch=384, dim=128, dim_multiplier=4)

    # Streamed (H-sliced accumulator) path forced on: grid = (2, 4).
    _run_case(k3, batch=128, dim=128, dim_multiplier=8, block_h=256,
              force_streamed=True)

    # f32 compute path as an exactness anchor (tight tolerance).
    _run_case(k4, batch=8, dim=32, dim_multiplier=4,
              compute_dtype=jnp.float32, tol=1e-4)

    print("KERNEL_OK")
</pallas_src>

<mosaic_0001>
module attributes {stable_mosaic.version = 11 : i64} {
  func.func @_mlp_fused_kernel(%arg0: i32, %arg1: memref<16x128xbf16, #tpu.memory_space<vmem>>, %arg2: memref<128x128xbf16, #tpu.memory_space<vmem>>, %arg3: memref<1x128xf32, #tpu.memory_space<vmem>>, %arg4: memref<128x128xbf16, #tpu.memory_space<vmem>>, %arg5: memref<1x128xf32, #tpu.memory_space<vmem>>, %arg6: memref<1x128xf32, #tpu.memory_space<vmem>>, %arg7: memref<16x128xf32, #tpu.memory_space<vmem>>) attributes {dimension_semantics = [#tpu.dimension_semantics<parallel>], iteration_bounds = array<i64: 1>, scalar_prefetch = 0 : i64, scratch_operands = 0 : i64, tpu.core_type = #tpu.core_type<tc>, window_params = [{transform_indices = @transform_0, window_bounds = array<i64: 16, 128>}, {pipeline_mode = #tpu.pipeline_mode<synchronous>, transform_indices = @transform_1, window_bounds = array<i64: 128, 128>}, {pipeline_mode = #tpu.pipeline_mode<synchronous>, transform_indices = @transform_2, window_bounds = array<i64: 1, 128>}, {pipeline_mode = #tpu.pipeline_mode<synchronous>, transform_indices = @transform_3, window_bounds = array<i64: 128, 128>}, {pipeline_mode = #tpu.pipeline_mode<synchronous>, transform_indices = @transform_4, window_bounds = array<i64: 1, 128>}, {pipeline_mode = #tpu.pipeline_mode<synchronous>, transform_indices = @transform_5, window_bounds = array<i64: 1, 128>}, {transform_indices = @transform_6, window_bounds = array<i64: 16, 128>}]} {
    %c0 = arith.constant 0 : index
    %c0_0 = arith.constant 0 : index
    %0 = vector.load %arg1[%c0, %c0_0] : memref<16x128xbf16, #tpu.memory_space<vmem>>, vector<16x128xbf16>
    %c0_1 = arith.constant 0 : index
    %c0_2 = arith.constant 0 : index
    %1 = vector.load %arg2[%c0_1, %c0_2] : memref<128x128xbf16, #tpu.memory_space<vmem>>, vector<128x128xbf16>
    %cst = arith.constant dense<0.000000e+00> : vector<16x128xf32>
    %2 = tpu.matmul %0, %1, %cst {dimension_numbers = #tpu.dot_dimension_numbers<[1], [0], [0], [1], [0, 0, 1, 1], [], []>} : vector<16x128xbf16>, vector<128x128xbf16>, vector<16x128xf32> -> vector<16x128xf32>
    %c0_3 = arith.constant 0 : index
    %c0_4 = arith.constant 0 : index
    %3 = vector.load %arg3[%c0_3, %c0_4] : memref<1x128xf32, #tpu.memory_space<vmem>>, vector<1x128xf32>
    %4 = vector.broadcast %3 : vector<1x128xf32> to vector<16x128xf32>
    %5 = arith.addf %2, %4 : vector<16x128xf32>
    %cst_5 = arith.constant 0.000000e+00 : f32
    %6 = vector.broadcast %cst_5 : f32 to vector<16x128xf32>
    %7 = arith.maximumf %5, %6 : vector<16x128xf32>
    %8 = arith.truncf %7 : vector<16x128xf32> to vector<16x128xbf16>
    %c0_6 = arith.constant 0 : index
    %c0_7 = arith.constant 0 : index
    %9 = vector.load %arg4[%c0_6, %c0_7] : memref<128x128xbf16, #tpu.memory_space<vmem>>, vector<128x128xbf16>
    %cst_8 = arith.constant dense<0.000000e+00> : vector<16x128xf32>
    %10 = tpu.matmul %8, %9, %cst_8 {dimension_numbers = #tpu.dot_dimension_numbers<[1], [0], [0], [1], [0, 0, 1, 1], [], []>} : vector<16x128xbf16>, vector<128x128xbf16>, vector<16x128xf32> -> vector<16x128xf32>
    %c0_9 = arith.constant 0 : index
    %c0_10 = arith.constant 0 : index
    %11 = vector.load %arg5[%c0_9, %c0_10] : memref<1x128xf32, #tpu.memory_space<vmem>>, vector<1x128xf32>
    %12 = vector.broadcast %11 : vector<1x128xf32> to vector<16x128xf32>
    %13 = arith.addf %10, %12 : vector<16x128xf32>
    %cst_11 = arith.constant 0.000000e+00 : f32
    %14 = vector.broadcast %cst_11 : f32 to vector<16x128xf32>
    %15 = arith.maximumf %13, %14 : vector<16x128xf32>
    %c0_12 = arith.constant 0 : index
    %c0_13 = arith.constant 0 : index
    %16 = vector.load %arg6[%c0_12, %c0_13] : memref<1x128xf32, #tpu.memory_space<vmem>>, vector<1x128xf32>
    %17 = vector.broadcast %16 : vector<1x128xf32> to vector<16x128xf32>
    %18 = arith.addf %15, %17 : vector<16x128xf32>
    %c0_14 = arith.constant 0 : index
    %c0_15 = arith.constant 0 : index
    %19 = vector.load %arg7[%c0_14, %c0_15] : memref<16x128xf32, #tpu.memory_space<vmem>>, vector<16x128xf32>
    tpu.vector_store %arg7[%c0_14, %c0_15], %18 {strides = array<i32>} : memref<16x128xf32, #tpu.memory_space<vmem>>, vector<16x128xf32>,
    return
  }
  func.func @transform_0(%arg0: i32) -> (i32, i32) {
    %c0_i32 = arith.constant 0 : i32
    %c0_i32_0 = arith.constant 0 : i32
    return %arg0, %c0_i32 : i32, i32
  }
  func.func @transform_1(%arg0: i32) -> (i32, i32) {
    %c0_i32 = arith.constant 0 : i32
    %c0_i32_0 = arith.constant 0 : i32
    %c0_i32_1 = arith.constant 0 : i32
    return %c0_i32, %c0_i32_0 : i32, i32
  }
  func.func @transform_2(%arg0: i32) -> (i32, i32) {
    %c0_i32 = arith.constant 0 : i32
    %c0_i32_0 = arith.constant 0 : i32
    %c0_i32_1 = arith.constant 0 : i32
    return %c0_i32, %c0_i32_0 : i32, i32
  }
  func.func @transform_3(%arg0: i32) -> (i32, i32) {
    %c0_i32 = arith.constant 0 : i32
    %c0_i32_0 = arith.constant 0 : i32
    %c0_i32_1 = arith.constant 0 : i32
    return %c0_i32, %c0_i32_0 : i32, i32
  }
  func.func @transform_4(%arg0: i32) -> (i32, i32) {
    %c0_i32 = arith.constant 0 : i32
    %c0_i32_0 = arith.constant 0 : i32
    %c0_i32_1 = arith.constant 0 : i32
    return %c0_i32, %c0_i32_0 : i32, i32
  }
  func.func @transform_5(%arg0: i32) -> (i32, i32) {
    %c0_i32 = arith.constant 0 : i32
    %c0_i32_0 = arith.constant 0 : i32
    %c0_i32_1 = arith.constant 0 : i32
    return %c0_i32, %c0_i32_0 : i32, i32
  }
  func.func @transform_6(%arg0: i32) -> (i32, i32) {
    %c0_i32 = arith.constant 0 : i32
    %c0_i32_0 = arith.constant 0 : i32
    return %arg0, %c0_i32 : i32, i32
  }
}

</mosaic_0001>

<bundles_post_ra>
// kernel: mlp_forward.1
= control target key start
LH: loop header
LB: loop body
LE: loop exit
PB: predicated region body
PF: predicated region fallthrough
CT: control target
= control target key end

     0   :  { %11 = vsyncpa [#allocation3], 0  ;;  %s453_s0 = inlined_call_operand.vmem [shape: bf16[16,128], index: 0, kind: input, shape index: {}]   ;;  %s454_s1 = inlined_call_operand.hbm [shape: bf16[128,128], index: 1, kind: input, shape index: {}]   ;;  %s455_s2 = inlined_call_operand.vmem [shape: f32[1,128], index: 2, kind: input, shape index: {}]   ;;  %s456_s3 = inlined_call_operand.hbm [shape: bf16[128,128], index: 3, kind: input, shape index: {}]   ;;  %s457_s4 = inlined_call_operand.vmem [shape: f32[1,128], index: 4, kind: input, shape index: {}]   ;;  %s458_s5 = inlined_call_operand.vmem [shape: f32[1,128], index: 5, kind: input, shape index: {}]   ;;  %s459_s6 = inlined_call_operand.vmem [shape: f32[16,128], index: 6, kind: output, shape index: {}]  }
   0x1   :  { %s19_s23 = sshll.u32 %s454_s1, 4  ;;  %s20_s23 = int_to_ptr.hbm [resolvable:$true] %s19_s23 }
   0x2   :  { %12 = vsyncpa [#allocation5], 0  ;;  %s390_s24 = smov [#allocation2]   ;;  %s34_s28 = sshll.u32 %s456_s3, 4  ;;  %s35_s28 = int_to_ptr.hbm [resolvable:$true] %s34_s28 }
   0x3   :  { %s21_s25 = sshll.u32 %s390_s24, 4  ;;  %s391_s29 = smov 64   ;;  %s22_s25 = int_to_ptr.vmem [resolvable:$true] %s21_s25 }
   0x4   :  { %s392_s30 = smov 4   ;;  %s393_s7 = smov [#allocation4]  }
   0x5   :  { %27 = dma.hbm_to_vmem [thread:$0]  %s20_s23, 1024, %s22_s25, [#allocation3], %s391_s29, %s391_s29, %s392_s30  }
   0x6   :  { %s36_s8 = sshll.u32 %s393_s7, 4  ;;  %s37_s8 = int_to_ptr.vmem [resolvable:$true] %s36_s8 }
   0x7   :  { %42 = dma.hbm_to_vmem [thread:$0]  %s35_s28, 1024, %s37_s8, [#allocation5], %s391_s29, %s391_s29, %s392_s30  }
   0x8   :  { %386 = dma.done.wait [#allocation3], 1024  }
   0x9   :  { %387 = vsyncadd [#allocation3], 4294966272 }
   0xa   :  { %388 = dma.done.wait [#allocation5], 1024  }
   0xb   :  { %389 = vsyncadd [#allocation5], 4294966272  ;;  %v322_v0 = vld [vmem:[#allocation2 + $0x38] sm:$0xff]  ;;  %v321_v1 = vld [vmem:[#allocation2 + $0x30] sm:$0xff] }
   0xc   :  { %131 = vmatpush.bf16.msra.mxu0 %v322_v0  ;;  %v330_v2 = vld [vmem:[#allocation4 + $0x38] sm:$0xff]  ;;  %v329_v3 = vld [vmem:[#allocation4 + $0x30] sm:$0xff]  ;;  %v320_v4 = vld [vmem:[#allocation2 + $0x28] sm:$0xff] }
   0xd   :  { %216 = vmatpush.bf16.msra.mxu1 %v330_v2  ;;  %v328_v5 = vld [vmem:[#allocation4 + $0x28] sm:$0xff]  ;;  %v319_v6 = vld [vmem:[#allocation2 + $0x20] sm:$0xff]  ;;  %v318_v8 = vld [vmem:[#allocation2 + $0x18] sm:$0xff] }
   0xe   :  { %v327_v7 = vld [vmem:[#allocation4 + $0x20] sm:$0xff]  ;;  %v317_v9 = vld [vmem:[#allocation2 + $0x10] sm:$0xff]  ;;  %v316_v10 = vld [vmem:[#allocation2 + $0x8] sm:$0xff] }
   0xf   :  { %v315_v11 = vld [vmem:[#allocation2] sm:$0xff]  ;;  %v326_v13 = vld [vmem:[#allocation4 + $0x18] sm:$0xff]  ;;  %v325_v14 = vld [vmem:[#allocation4 + $0x10] sm:$0xff] }
  0x10   :  { %132 = vmatpush.bf16.msra.mxu0 %v321_v1  ;;  %v314_v12 = vld [vmem:[%s453_s0] sm:$0xff]  ;;  %v324_v15 = vld [vmem:[#allocation4 + $0x8] sm:$0xff] }
  0x11   :  { %217 = vmatpush.bf16.msra.mxu1 %v329_v3  ;;  %v323_v16 = vld [vmem:[#allocation4] sm:$0xff] }
  0x12   :  { %v335_v18 = vld [vmem:[%s455_s2] ss:$0 sm:$0xff] }
  0x13   :  { %v336_v25 = vld [vmem:[%s457_s4] ss:$0 sm:$0xff] }
  0x14   :  { %133 = vmatpush.bf16.msra.mxu0 %v320_v4  ;;  %v337_v28 = vld [vmem:[%s458_s5] ss:$0 sm:$0xff] }
  0x15   :  { %218 = vmatpush.bf16.msra.mxu1 %v328_v5 }
  0x18   :  { %134 = vmatpush.bf16.msra.mxu0 %v319_v6 }
  0x19   :  { %219 = vmatpush.bf16.msra.mxu1 %v327_v7 }
  0x1c   :  { %135 = vmatpush.bf16.msra.mxu0 %v318_v8 }
  0x1d   :  { %220 = vmatpush.bf16.msra.mxu1 %v326_v13 }
  0x20   :  { %136 = vmatpush.bf16.msra.mxu0 %v317_v9 }
  0x21   :  { %221 = vmatpush.bf16.msra.mxu1 %v325_v14 }
  0x24   :  { %137 = vmatpush.bf16.msra.mxu0 %v316_v10 }
  0x25   :  { %222 = vmatpush.bf16.msra.mxu1 %v324_v15 }
  0x28   :  { %138 = vmatpush.bf16.msra.mxu0 %v315_v11 }
  0x29   :  { %223 = vmatpush.bf16.msra.mxu1 %v323_v16 }
  0x2b   :  { %139 = vmatmul.bf16.vlgmr.msra.gmra.mxu0 %v314_v12 }
  0xa8   :  { %v140_v17 = vpop.f32.mrf.mxu0 }
  0xa9   :  { %v141_v19 = vadd.f32 %v335_v18, %v140_v17 }
  0xab   :  { %v145_v22 = vmax.f32 %v141_v19, 0.0 }
  0xb0   :  { %v142_v20 = vpop.f32.mrf.mxu0 }
  0xb1   :  { %v143_v21 = vadd.f32 %v335_v18, %v142_v20 }
  0xb3   :  { %v146_v23 = vmax.f32 %v143_v21, 0.0 }
  0xb5   :  { %v147_v24 = vpack.c.bf16 %v146_v23, %v145_v22 }
  0xb7   :  { %224 = vmatmul.bf16.vlgmr.msra.gmra.mxu1 %v147_v24 }
 0x134   :  { %v225_v26 = vpop.f32.mrf.mxu1 }
 0x135   :  { %v226_v27 = vadd.f32 %v336_v25, %v225_v26 }
 0x137   :  { %v230_v29 = vmax.f32 %v226_v27, 0.0 }
 0x139   :  { %v236_v30 = vadd.f32 %v337_v28, %v230_v29 }
 0x13b   :  { %238 = vst [vmem:[%s459_s6] sm:$0xff] %v236_v30 }
 0x13c   :  { %v227_v31 = vpop.f32.mrf.mxu1 }
 0x13d   :  { %v228_v32 = vadd.f32 %v336_v25, %v227_v31 }
 0x13f   :  { %v231_v33 = vmax.f32 %v228_v32, 0.0 }
 0x141   :  { %v237_v34 = vadd.f32 %v337_v28, %v231_v33 }
 0x143   :  { %239 = vst [vmem:[%s459_s6 + $0x8] sm:$0xff] %v237_v34 }
 0x144   :  { %244 = vsyncpa [#allocation3], 1 }
 0x145   :  { %245 = vsyncpa [#allocation5], 1 }

</bundles_post_ra>
